<compile_context>
chip_gen: v7x
topology: tpu7x:2x2x1
jax: 0.10.0
libtpu: 0.0.40
codegen_flags: <defaults>
</compile_context>

<pallas_src>
import jax
import jax.numpy as jnp
from jax import lax
from jax.experimental import pallas as pl
from jax.experimental.pallas import tpu as pltpu

EPS = 1e-5  # nn.BatchNorm1d default eps


# --------------------------------------------------------------------------- #
# kernel bodies
# --------------------------------------------------------------------------- #
def _boundary_masks(length):
    """(1, L) f32 masks: 0.0 at l == 0 (left edge) / l == L-1 (right edge)."""
    lane = lax.broadcasted_iota(jnp.int32, (1, length), 1)
    lmask = (lane != 0).astype(jnp.float32)
    rmask = (lane != length - 1).astype(jnp.float32)
    return lmask, rmask


def _conv_k3(w_ref, x, lmask, rmask):
    """3-tap conv on an (C_in, L) f32 tile as three accumulated MXU matmuls.

    w_ref is tap-major (3, C_out, C_in) in the MXU operand dtype; no (3C, L)
    im2col buffer is materialized — +/-1 shifts use the XLU (pltpu.roll) plus a
    boundary mask, zero physical padding.
    """
    cdt = w_ref.dtype
    L = x.shape[-1]
    x_lm1 = pltpu.roll(x, shift=1, axis=1) * lmask      # x[l-1], zeroed at l==0
    x_lp1 = pltpu.roll(x, shift=L - 1, axis=1) * rmask  # x[l+1], zeroed at l==L-1
    acc = jnp.dot(w_ref[0], x_lm1.astype(cdt), preferred_element_type=jnp.float32)
    acc = acc + jnp.dot(w_ref[1], x.astype(cdt), preferred_element_type=jnp.float32)
    acc = acc + jnp.dot(w_ref[2], x_lp1.astype(cdt), preferred_element_type=jnp.float32)
    return acc


def _partial_stats(y):
    """Per-tile BatchNorm partials: (C, 2) = [sum, sum-of-squares] over lanes."""
    return jnp.concatenate(
        [jnp.sum(y, axis=1, keepdims=True),
         jnp.sum(y * y, axis=1, keepdims=True)], axis=1)


def _kernel_a(x_ref, w4_ref, b4_ref, w1_ref, w3_ref,
              c1_ref, c3_ref, st1_ref, st3_ref):
    """Pass A: conv4 -> conv1 / conv3 for one sample + BN1/BN3 partial stats."""
    lmask, rmask = _boundary_masks(x_ref.shape[-1])
    x = x_ref[...].astype(jnp.float32)
    c4 = _conv_k3(w4_ref, x, lmask, rmask) + b4_ref[...]   # conv4 bias kept (edge-masked taps)
    # conv1/conv2/conv3 biases are dropped: a per-channel constant added right
    # before training-mode BatchNorm cancels exactly in (y - mean).
    c1 = _conv_k3(w1_ref, c4, lmask, rmask)
    c3 = jnp.dot(w3_ref[...], c4.astype(w3_ref.dtype),     # 1x1 conv
                 preferred_element_type=jnp.float32)
    c1_ref[...] = c1.astype(c1_ref.dtype)
    c3_ref[...] = c3.astype(c3_ref.dtype)
    st1_ref[...] = _partial_stats(c1)
    st3_ref[...] = _partial_stats(c3)
    # TODO(synk): when C <= 128 on v6e/v7x, stack the conv1 and conv3 output
    # rows into a single MXU pass to fill otherwise-idle MXU rows.


def _kernel_b(c1_ref, s1_ref, sh1_ref, w2_ref, c2_ref, st2_ref):
    """Pass B: BN1 + ReLU1 -> conv2 for one sample + BN2 partial stats."""
    lmask, rmask = _boundary_masks(c1_ref.shape[-1])
    r1 = jnp.maximum(c1_ref[...].astype(jnp.float32) * s1_ref[...] + sh1_ref[...], 0.0)
    c2 = _conv_k3(w2_ref, r1, lmask, rmask)
    c2_ref[...] = c2.astype(c2_ref.dtype)
    st2_ref[...] = _partial_stats(c2)


def _kernel_c(c2_ref, c3_ref, s2_ref, sh2_ref, s3_ref, sh3_ref, out_ref):
    """Pass C: BN2(conv2) + BN3(conv3) residual add + ReLU2."""
    y2 = c2_ref[...].astype(jnp.float32) * s2_ref[...] + sh2_ref[...]
    y3 = c3_ref[...].astype(jnp.float32) * s3_ref[...] + sh3_ref[...]
    out_ref[...] = jnp.maximum(y2 + y3, 0.0).astype(out_ref.dtype)


# --------------------------------------------------------------------------- #
# wrapper
# --------------------------------------------------------------------------- #
def _samp_spec(rows, cols):
    # (N, rows, cols) array; kernel sees a (rows, cols) block for sample n.
    # The (N,C,L) <-> per-sample (C,L) layout change rides on the block DMA
    # (no wrapper-side jnp.transpose / reshape round trips through HBM).
    return pl.BlockSpec((pl.Squeezed(), rows, cols), lambda n: (n, 0, 0))


def _const_spec(shape):
    # Full-array block whose index never changes -> stays resident in VMEM.
    if len(shape) == 2:
        return pl.BlockSpec(shape, lambda n: (0, 0))
    return pl.BlockSpec(shape, lambda n: (0, 0, 0))


def _vmem_limit_bytes():
    # Per-generation scoped-VMEM limit: physical capacity minus headroom
    # (v5e/v6e 128 MiB -> 120 MiB; v7x 64 MiB -> 56 MiB), robust fallback.
    try:
        cap = int(pltpu.get_tpu_info().vmem_capacity_bytes)
    except Exception:
        return None
    if cap <= 0:
        return None
    return int(max(min(cap - (8 << 20), 120 << 20), 16 << 20))


def _bn_affine(partial_stats, gamma, beta, count):
    """Fold per-tile [sum, sumsq] partials into per-channel BN scale/shift."""
    s = jnp.sum(partial_stats.astype(jnp.float32), axis=0)        # (C, 2)
    mean = s[:, 0] / count
    var = jnp.maximum(s[:, 1] / count - mean * mean, 0.0)         # clamp >= 0
    scale = gamma.astype(jnp.float32) * lax.rsqrt(var + EPS)
    shift = beta.astype(jnp.float32) - mean * scale
    return scale.reshape(-1, 1), shift.reshape(-1, 1)


def resblock_1d_edit(x, params, compute_dtype=jnp.bfloat16):
    """x: (N, C, L) float32 -> (N, C, L) float32 (training-mode BatchNorm)."""
    N, C_in, L = x.shape
    C = params["w4"].shape[0]
    if C_in != C:
        raise ValueError("ResBlock_1d_edit forward requires in_channels == out_channels")
    NL = float(N * L)
    cdt = compute_dtype

    def taps(w):  # (Cout, Cin, 3) -> (3, Cout, Cin), cast once to MXU operand dtype
        return jnp.transpose(w, (2, 0, 1)).astype(cdt)

    w4 = taps(params["w4"])
    w1 = taps(params["w1"])
    w2 = taps(params["w2"])
    w3 = params["w3"][:, :, 0].astype(cdt)
    b4 = params["b4"].reshape(-1, 1).astype(jnp.float32)

    limit = _vmem_limit_bytes()
    cp_kwargs = dict(dimension_semantics=("parallel",))  # shards batch over v7x's 2 TCs
    if limit is not None:
        cp_kwargs["vmem_limit_bytes"] = limit
    cp = pltpu.CompilerParams(**cp_kwargs)

    act = _samp_spec(C, L)
    stat = _samp_spec(C, 2)

    # ---- pass A: conv4 -> conv1/conv3, BN1/BN3 partial stats ---------------
    c1, c3, st1, st3 = pl.pallas_call(
        _kernel_a,
        grid=(N,),
        in_specs=[_samp_spec(C_in, L),
                  _const_spec((3, C, C_in)), _const_spec((C, 1)),
                  _const_spec((3, C, C)), _const_spec((C, C_in))],
        out_specs=(act, act, stat, stat),
        out_shape=(jax.ShapeDtypeStruct((N, C, L), cdt),
                   jax.ShapeDtypeStruct((N, C, L), cdt),
                   jax.ShapeDtypeStruct((N, C, 2), jnp.float32),
                   jax.ShapeDtypeStruct((N, C, 2), jnp.float32)),
        compiler_params=cp,
    )(x, w4, b4, w1, w3)

    s1, sh1 = _bn_affine(st1, params["g1"], params["be1"], NL)
    s3, sh3 = _bn_affine(st3, params["g3"], params["be3"], NL)

    # ---- pass B: BN1 + ReLU1 -> conv2, BN2 partial stats -------------------
    c2, st2 = pl.pallas_call(
        _kernel_b,
        grid=(N,),
        in_specs=[act, _const_spec((C, 1)), _const_spec((C, 1)),
                  _const_spec((3, C, C))],
        out_specs=(act, stat),
        out_shape=(jax.ShapeDtypeStruct((N, C, L), cdt),
                   jax.ShapeDtypeStruct((N, C, 2), jnp.float32)),
        compiler_params=cp,
    )(c1, s1, sh1, w2)

    s2, sh2 = _bn_affine(st2, params["g2"], params["be2"], NL)

    # ---- pass C: BN2 + BN3 + residual + ReLU2 -------------------------------
    out = pl.pallas_call(
        _kernel_c,
        grid=(N,),
        in_specs=[act, act,
                  _const_spec((C, 1)), _const_spec((C, 1)),
                  _const_spec((C, 1)), _const_spec((C, 1))],
        out_specs=act,
        out_shape=jax.ShapeDtypeStruct((N, C, L), jnp.float32),
        compiler_params=cp,
    )(c2, c3, s2, sh2, s3, sh3)

    # TODO(synk): for large N*L, pack k samples per grid step (tile width k*L
    # padded to a multiple of 128, padded lanes masked out of the BN partials)
    # to get fully lane-dense vst stores.
    return out


# --------------------------------------------------------------------------- #
# params / reference / test
# --------------------------------------------------------------------------- #
def init_params(key, c_in, c_out):
    ks = jax.random.split(key, 10)

    def kaiming(k, shape):
        fan_in = shape[1] * shape[2]
        return jax.random.normal(k, shape, jnp.float32) * jnp.sqrt(2.0 / fan_in)

    return {
        "w4": kaiming(ks[0], (c_out, c_in, 3)),  "b4": jnp.zeros((c_out,), jnp.float32),
        "w1": kaiming(ks[1], (c_out, c_in, 3)),  "b1": jnp.zeros((c_out,), jnp.float32),
        "w2": kaiming(ks[2], (c_out, c_out, 3)), "b2": jnp.zeros((c_out,), jnp.float32),
        "w3": kaiming(ks[3], (c_out, c_in, 1)),  "b3": jnp.zeros((c_out,), jnp.float32),
        "g1": 1.0 + 0.1 * jax.random.normal(ks[4], (c_out,), jnp.float32),
        "be1": 0.1 * jax.random.normal(ks[5], (c_out,), jnp.float32),
        "g2": 1.0 + 0.1 * jax.random.normal(ks[6], (c_out,), jnp.float32),
        "be2": 0.1 * jax.random.normal(ks[7], (c_out,), jnp.float32),
        "g3": 1.0 + 0.1 * jax.random.normal(ks[8], (c_out,), jnp.float32),
        "be3": 0.1 * jax.random.normal(ks[9], (c_out,), jnp.float32),
    }


def _ref_forward(x, p):
    # pure-JAX f32 reference of the PyTorch forward (training-mode BatchNorm).
    def conv1d(x, w, b):
        K = w.shape[-1]
        pad = (K - 1) // 2
        L = x.shape[-1]
        xp = jnp.pad(x, ((0, 0), (0, 0), (pad, pad)))
        acc = b[None, :, None]
        for k in range(K):
            acc = acc + jnp.einsum('oi,nil->nol', w[:, :, k], xp[:, :, k:k + L])
        return acc

    def bn(y, g, be):
        m = jnp.mean(y, axis=(0, 2), keepdims=True)
        v = jnp.mean((y - m) ** 2, axis=(0, 2), keepdims=True)
        return (y - m) / jnp.sqrt(v + EPS) * g[None, :, None] + be[None, :, None]

    conv4 = conv1d(x, p["w4"], p["b4"])
    conv1 = bn(conv1d(conv4, p["w1"], p["b1"]), p["g1"], p["be1"])
    relu1 = jnp.maximum(conv1, 0.0)
    conv2 = bn(conv1d(relu1, p["w2"], p["b2"]), p["g2"], p["be2"])
    conv3 = bn(conv1d(conv4, p["w3"], p["b3"]), p["g3"], p["be3"])
    return jnp.maximum(conv3 + conv2, 0.0)


if __name__ == "__main__":
    key = jax.random.PRNGKey(0)
    kx, kp = jax.random.split(key)
    # in_channels == out_channels is required for the module's forward to be valid
    N, C, L = 4, 8, 32
    x = jax.random.normal(kx, (N, C, L), jnp.float32)
    params = init_params(kp, C, C)

    ref = _ref_forward(x, params)

    # exact-math path (f32 MXU operands): tight algorithmic check
    out_f32 = jax.block_until_ready(resblock_1d_edit(x, params, compute_dtype=jnp.float32))
    assert out_f32.shape == (N, C, L)
    err_f32 = float(jnp.max(jnp.abs(out_f32 - ref)))
    if not jnp.allclose(out_f32, ref, atol=1e-4, rtol=1e-4):
        raise SystemExit("f32 mismatch: max abs err = %g" % err_f32)

    # default fast path: bf16 MXU operands / bf16 intermediates, f32 BN & math
    out = jax.block_until_ready(resblock_1d_edit(x, params))
    assert out.shape == (N, C, L)
    err = float(jnp.max(jnp.abs(out - ref)))
    tol = 0.05 * (float(jnp.max(jnp.abs(ref))) + 1.0)
    if err > tol:
        raise SystemExit("bf16 mismatch: max abs err = %g (tol %g)" % (err, tol))

    print("KERNEL_OK")
</pallas_src>

<mosaic_0001>
module attributes {stable_mosaic.version = 11 : i64} {
  func.func @_kernel_a(%arg0: i32, %arg1: memref<1x8x32xf32, #tpu.memory_space<vmem>>, %arg2: memref<3x8x8xf32, #tpu.memory_space<vmem>>, %arg3: memref<8x1xf32, #tpu.memory_space<vmem>>, %arg4: memref<3x8x8xf32, #tpu.memory_space<vmem>>, %arg5: memref<8x8xf32, #tpu.memory_space<vmem>>, %arg6: memref<1x8x32xf32, #tpu.memory_space<vmem>>, %arg7: memref<1x8x32xf32, #tpu.memory_space<vmem>>, %arg8: memref<1x8x2xf32, #tpu.memory_space<vmem>>, %arg9: memref<1x8x2xf32, #tpu.memory_space<vmem>>) attributes {dimension_semantics = [#tpu.dimension_semantics<parallel>], iteration_bounds = array<i64: 4>, scalar_prefetch = 0 : i64, scratch_operands = 0 : i64, tpu.core_type = #tpu.core_type<tc>, window_params = [{transform_indices = @transform_0, window_bounds = array<i64: 1, 8, 32>}, {pipeline_mode = #tpu.pipeline_mode<synchronous>, transform_indices = @transform_1, window_bounds = array<i64: 3, 8, 8>}, {pipeline_mode = #tpu.pipeline_mode<synchronous>, transform_indices = @transform_2, window_bounds = array<i64: 8, 1>}, {pipeline_mode = #tpu.pipeline_mode<synchronous>, transform_indices = @transform_3, window_bounds = array<i64: 3, 8, 8>}, {pipeline_mode = #tpu.pipeline_mode<synchronous>, transform_indices = @transform_4, window_bounds = array<i64: 8, 8>}, {transform_indices = @transform_5, window_bounds = array<i64: 1, 8, 32>}, {transform_indices = @transform_6, window_bounds = array<i64: 1, 8, 32>}, {transform_indices = @transform_7, window_bounds = array<i64: 1, 8, 2>}, {transform_indices = @transform_8, window_bounds = array<i64: 1, 8, 2>}]} {
    %0 = tpu.iota {dimensions = array<i32: 1>} : vector<1x32xi32>
    %c0_i32 = arith.constant 0 : i32
    %1 = vector.broadcast %c0_i32 : i32 to vector<1x32xi32>
    %2 = arith.cmpi ne, %0, %1 : vector<1x32xi32>
    %3 = arith.extui %2 : vector<1x32xi1> to vector<1x32xi32>
    %4 = arith.sitofp %3 : vector<1x32xi32> to vector<1x32xf32>
    %c31_i32 = arith.constant 31 : i32
    %5 = vector.broadcast %c31_i32 : i32 to vector<1x32xi32>
    %6 = arith.cmpi ne, %0, %5 : vector<1x32xi32>
    %7 = arith.extui %6 : vector<1x32xi1> to vector<1x32xi32>
    %8 = arith.sitofp %7 : vector<1x32xi32> to vector<1x32xf32>
    %c0 = arith.constant 0 : index
    %c0_0 = arith.constant 0 : index
    %c0_1 = arith.constant 0 : index
    %9 = vector.load %arg1[%c0, %c0_0, %c0_1] : memref<1x8x32xf32, #tpu.memory_space<vmem>>, vector<1x8x32xf32>
    %10 = vector.shape_cast %9 : vector<1x8x32xf32> to vector<8x32xf32>
    %c1_i32 = arith.constant 1 : i32
    %11 = tpu.dynamic_rotate %10 by %c1_i32 dim 1 : vector<8x32xf32>, i32 -> vector<8x32xf32>
    %12 = vector.broadcast %4 : vector<1x32xf32> to vector<8x32xf32>
    %13 = arith.mulf %11, %12 : vector<8x32xf32>
    %c31_i32_2 = arith.constant 31 : i32
    %14 = tpu.dynamic_rotate %10 by %c31_i32_2 dim 1 : vector<8x32xf32>, i32 -> vector<8x32xf32>
    %15 = vector.broadcast %8 : vector<1x32xf32> to vector<8x32xf32>
    %16 = arith.mulf %14, %15 : vector<8x32xf32>
    %c0_3 = arith.constant 0 : index
    %c0_4 = arith.constant 0 : index
    %c0_5 = arith.constant 0 : index
    %17 = vector.load %arg2[%c0_3, %c0_4, %c0_5] : memref<3x8x8xf32, #tpu.memory_space<vmem>>, vector<1x8x8xf32>
    %18 = vector.shape_cast %17 : vector<1x8x8xf32> to vector<8x8xf32>
    %cst = arith.constant dense<0.000000e+00> : vector<8x32xf32>
    %19 = tpu.matmul %18, %13, %cst {dimension_numbers = #tpu.dot_dimension_numbers<[1], [0], [0], [1], [0, 0, 1, 1], [], []>} : vector<8x8xf32>, vector<8x32xf32>, vector<8x32xf32> -> vector<8x32xf32>
    %c1 = arith.constant 1 : index
    %c0_6 = arith.constant 0 : index
    %c0_7 = arith.constant 0 : index
    %20 = vector.load %arg2[%c1, %c0_6, %c0_7] : memref<3x8x8xf32, #tpu.memory_space<vmem>>, vector<1x8x8xf32>
    %21 = vector.shape_cast %20 : vector<1x8x8xf32> to vector<8x8xf32>
    %cst_8 = arith.constant dense<0.000000e+00> : vector<8x32xf32>
    %22 = tpu.matmul %21, %10, %cst_8 {dimension_numbers = #tpu.dot_dimension_numbers<[1], [0], [0], [1], [0, 0, 1, 1], [], []>} : vector<8x8xf32>, vector<8x32xf32>, vector<8x32xf32> -> vector<8x32xf32>
    %23 = arith.addf %19, %22 : vector<8x32xf32>
    %c2 = arith.constant 2 : index
    %c0_9 = arith.constant 0 : index
    %c0_10 = arith.constant 0 : index
    %24 = vector.load %arg2[%c2, %c0_9, %c0_10] : memref<3x8x8xf32, #tpu.memory_space<vmem>>, vector<1x8x8xf32>
    %25 = vector.shape_cast %24 : vector<1x8x8xf32> to vector<8x8xf32>
    %cst_11 = arith.constant dense<0.000000e+00> : vector<8x32xf32>
    %26 = tpu.matmul %25, %16, %cst_11 {dimension_numbers = #tpu.dot_dimension_numbers<[1], [0], [0], [1], [0, 0, 1, 1], [], []>} : vector<8x8xf32>, vector<8x32xf32>, vector<8x32xf32> -> vector<8x32xf32>
    %27 = arith.addf %23, %26 : vector<8x32xf32>
    %c0_12 = arith.constant 0 : index
    %c0_13 = arith.constant 0 : index
    %28 = vector.load %arg3[%c0_12, %c0_13] : memref<8x1xf32, #tpu.memory_space<vmem>>, vector<8x1xf32>
    %29 = vector.broadcast %28 : vector<8x1xf32> to vector<8x32xf32>
    %30 = arith.addf %27, %29 : vector<8x32xf32>
    %c1_i32_14 = arith.constant 1 : i32
    %31 = tpu.dynamic_rotate %30 by %c1_i32_14 dim 1 : vector<8x32xf32>, i32 -> vector<8x32xf32>
    %32 = vector.broadcast %4 : vector<1x32xf32> to vector<8x32xf32>
    %33 = arith.mulf %31, %32 : vector<8x32xf32>
    %c31_i32_15 = arith.constant 31 : i32
    %34 = tpu.dynamic_rotate %30 by %c31_i32_15 dim 1 : vector<8x32xf32>, i32 -> vector<8x32xf32>
    %35 = vector.broadcast %8 : vector<1x32xf32> to vector<8x32xf32>
    %36 = arith.mulf %34, %35 : vector<8x32xf32>
    %c0_16 = arith.constant 0 : index
    %c0_17 = arith.constant 0 : index
    %c0_18 = arith.constant 0 : index
    %37 = vector.load %arg4[%c0_16, %c0_17, %c0_18] : memref<3x8x8xf32, #tpu.memory_space<vmem>>, vector<1x8x8xf32>
    %38 = vector.shape_cast %37 : vector<1x8x8xf32> to vector<8x8xf32>
    %cst_19 = arith.constant dense<0.000000e+00> : vector<8x32xf32>
    %39 = tpu.matmul %38, %33, %cst_19 {dimension_numbers = #tpu.dot_dimension_numbers<[1], [0], [0], [1], [0, 0, 1, 1], [], []>} : vector<8x8xf32>, vector<8x32xf32>, vector<8x32xf32> -> vector<8x32xf32>
    %c1_20 = arith.constant 1 : index
    %c0_21 = arith.constant 0 : index
    %c0_22 = arith.constant 0 : index
    %40 = vector.load %arg4[%c1_20, %c0_21, %c0_22] : memref<3x8x8xf32, #tpu.memory_space<vmem>>, vector<1x8x8xf32>
    %41 = vector.shape_cast %40 : vector<1x8x8xf32> to vector<8x8xf32>
    %cst_23 = arith.constant dense<0.000000e+00> : vector<8x32xf32>
    %42 = tpu.matmul %41, %30, %cst_23 {dimension_numbers = #tpu.dot_dimension_numbers<[1], [0], [0], [1], [0, 0, 1, 1], [], []>} : vector<8x8xf32>, vector<8x32xf32>, vector<8x32xf32> -> vector<8x32xf32>
    %43 = arith.addf %39, %42 : vector<8x32xf32>
    %c2_24 = arith.constant 2 : index
    %c0_25 = arith.constant 0 : index
    %c0_26 = arith.constant 0 : index
    %44 = vector.load %arg4[%c2_24, %c0_25, %c0_26] : memref<3x8x8xf32, #tpu.memory_space<vmem>>, vector<1x8x8xf32>
    %45 = vector.shape_cast %44 : vector<1x8x8xf32> to vector<8x8xf32>
    %cst_27 = arith.constant dense<0.000000e+00> : vector<8x32xf32>
    %46 = tpu.matmul %45, %36, %cst_27 {dimension_numbers = #tpu.dot_dimension_numbers<[1], [0], [0], [1], [0, 0, 1, 1], [], []>} : vector<8x8xf32>, vector<8x32xf32>, vector<8x32xf32> -> vector<8x32xf32>
    %47 = arith.addf %43, %46 : vector<8x32xf32>
    %c0_28 = arith.constant 0 : index
    %c0_29 = arith.constant 0 : index
    %48 = vector.load %arg5[%c0_28, %c0_29] : memref<8x8xf32, #tpu.memory_space<vmem>>, vector<8x8xf32>
    %cst_30 = arith.constant dense<0.000000e+00> : vector<8x32xf32>
    %49 = tpu.matmul %48, %30, %cst_30 {dimension_numbers = #tpu.dot_dimension_numbers<[1], [0], [0], [1], [0, 0, 1, 1], [], []>} : vector<8x8xf32>, vector<8x32xf32>, vector<8x32xf32> -> vector<8x32xf32>
    %c0_31 = arith.constant 0 : index
    %c0_32 = arith.constant 0 : index
    %c0_33 = arith.constant 0 : index
    %50 = vector.load %arg6[%c0_31, %c0_32, %c0_33] : memref<1x8x32xf32, #tpu.memory_space<vmem>>, vector<1x8x32xf32>
    %51 = vector.shape_cast %50 : vector<1x8x32xf32> to vector<8x32xf32>
    %52 = vector.shape_cast %47 : vector<8x32xf32> to vector<1x8x32xf32>
    tpu.vector_store %arg6[%c0_31, %c0_32, %c0_33], %52 {strides = array<i32>} : memref<1x8x32xf32, #tpu.memory_space<vmem>>, vector<1x8x32xf32>,
    %c0_34 = arith.constant 0 : index
    %c0_35 = arith.constant 0 : index
    %c0_36 = arith.constant 0 : index
    %53 = vector.load %arg7[%c0_34, %c0_35, %c0_36] : memref<1x8x32xf32, #tpu.memory_space<vmem>>, vector<1x8x32xf32>
    %54 = vector.shape_cast %53 : vector<1x8x32xf32> to vector<8x32xf32>
    %55 = vector.shape_cast %49 : vector<8x32xf32> to vector<1x8x32xf32>
    tpu.vector_store %arg7[%c0_34, %c0_35, %c0_36], %55 {strides = array<i32>} : memref<1x8x32xf32, #tpu.memory_space<vmem>>, vector<1x8x32xf32>,
    %cst_37 = arith.constant dense<0.000000e+00> : vector<8xf32>
    %56 = vector.multi_reduction <add>, %47, %cst_37 [1] : vector<8x32xf32> to vector<8xf32>
    %57 = vector.shape_cast %56 : vector<8xf32> to vector<8x1xf32>
    %58 = arith.mulf %47, %47 : vector<8x32xf32>
    %cst_38 = arith.constant dense<0.000000e+00> : vector<8xf32>
    %59 = vector.multi_reduction <add>, %58, %cst_38 [1] : vector<8x32xf32> to vector<8xf32>
    %60 = vector.shape_cast %59 : vector<8xf32> to vector<8x1xf32>
    %61 = tpu.concatenate %57, %60 in 1 : vector<8x1xf32>, vector<8x1xf32> -> vector<8x2xf32>
    %c0_39 = arith.constant 0 : index
    %c0_40 = arith.constant 0 : index
    %c0_41 = arith.constant 0 : index
    %62 = vector.load %arg8[%c0_39, %c0_40, %c0_41] : memref<1x8x2xf32, #tpu.memory_space<vmem>>, vector<1x8x2xf32>
    %63 = vector.shape_cast %62 : vector<1x8x2xf32> to vector<8x2xf32>
    %64 = vector.shape_cast %61 : vector<8x2xf32> to vector<1x8x2xf32>
    tpu.vector_store %arg8[%c0_39, %c0_40, %c0_41], %64 {strides = array<i32>} : memref<1x8x2xf32, #tpu.memory_space<vmem>>, vector<1x8x2xf32>,
    %cst_42 = arith.constant dense<0.000000e+00> : vector<8xf32>
    %65 = vector.multi_reduction <add>, %49, %cst_42 [1] : vector<8x32xf32> to vector<8xf32>
    %66 = vector.shape_cast %65 : vector<8xf32> to vector<8x1xf32>
    %67 = arith.mulf %49, %49 : vector<8x32xf32>
    %cst_43 = arith.constant dense<0.000000e+00> : vector<8xf32>
    %68 = vector.multi_reduction <add>, %67, %cst_43 [1] : vector<8x32xf32> to vector<8xf32>
    %69 = vector.shape_cast %68 : vector<8xf32> to vector<8x1xf32>
    %70 = tpu.concatenate %66, %69 in 1 : vector<8x1xf32>, vector<8x1xf32> -> vector<8x2xf32>
    %c0_44 = arith.constant 0 : index
    %c0_45 = arith.constant 0 : index
    %c0_46 = arith.constant 0 : index
    %71 = vector.load %arg9[%c0_44, %c0_45, %c0_46] : memref<1x8x2xf32, #tpu.memory_space<vmem>>, vector<1x8x2xf32>
    %72 = vector.shape_cast %71 : vector<1x8x2xf32> to vector<8x2xf32>
    %73 = vector.shape_cast %70 : vector<8x2xf32> to vector<1x8x2xf32>
    tpu.vector_store %arg9[%c0_44, %c0_45, %c0_46], %73 {strides = array<i32>} : memref<1x8x2xf32, #tpu.memory_space<vmem>>, vector<1x8x2xf32>,
    return
  }
  func.func @transform_0(%arg0: i32) -> (i32, i32, i32) {
    %c0_i32 = arith.constant 0 : i32
    %c0_i32_0 = arith.constant 0 : i32
    %c0_i32_1 = arith.constant 0 : i32
    return %arg0, %c0_i32, %c0_i32_0 : i32, i32, i32
  }
  func.func @transform_1(%arg0: i32) -> (i32, i32, i32) {
    %c0_i32 = arith.constant 0 : i32
    %c0_i32_0 = arith.constant 0 : i32
    %c0_i32_1 = arith.constant 0 : i32
    %c0_i32_2 = arith.constant 0 : i32
    return %c0_i32, %c0_i32_0, %c0_i32_1 : i32, i32, i32
  }
  func.func @transform_2(%arg0: i32) -> (i32, i32) {
    %c0_i32 = arith.constant 0 : i32
    %c0_i32_0 = arith.constant 0 : i32
    %c0_i32_1 = arith.constant 0 : i32
    return %c0_i32, %c0_i32_0 : i32, i32
  }
  func.func @transform_3(%arg0: i32) -> (i32, i32, i32) {
    %c0_i32 = arith.constant 0 : i32
    %c0_i32_0 = arith.constant 0 : i32
    %c0_i32_1 = arith.constant 0 : i32
    %c0_i32_2 = arith.constant 0 : i32
    return %c0_i32, %c0_i32_0, %c0_i32_1 : i32, i32, i32
  }
  func.func @transform_4(%arg0: i32) -> (i32, i32) {
    %c0_i32 = arith.constant 0 : i32
    %c0_i32_0 = arith.constant 0 : i32
    %c0_i32_1 = arith.constant 0 : i32
    return %c0_i32, %c0_i32_0 : i32, i32
  }
  func.func @transform_5(%arg0: i32) -> (i32, i32, i32) {
    %c0_i32 = arith.constant 0 : i32
    %c0_i32_0 = arith.constant 0 : i32
    %c0_i32_1 = arith.constant 0 : i32
    return %arg0, %c0_i32, %c0_i32_0 : i32, i32, i32
  }
  func.func @transform_6(%arg0: i32) -> (i32, i32, i32) {
    %c0_i32 = arith.constant 0 : i32
    %c0_i32_0 = arith.constant 0 : i32
    %c0_i32_1 = arith.constant 0 : i32
    return %arg0, %c0_i32, %c0_i32_0 : i32, i32, i32
  }
  func.func @transform_7(%arg0: i32) -> (i32, i32, i32) {
    %c0_i32 = arith.constant 0 : i32
    %c0_i32_0 = arith.constant 0 : i32
    %c0_i32_1 = arith.constant 0 : i32
    return %arg0, %c0_i32, %c0_i32_0 : i32, i32, i32
  }
  func.func @transform_8(%arg0: i32) -> (i32, i32, i32) {
    %c0_i32 = arith.constant 0 : i32
    %c0_i32_0 = arith.constant 0 : i32
    %c0_i32_1 = arith.constant 0 : i32
    return %arg0, %c0_i32, %c0_i32_0 : i32, i32, i32
  }
}

</mosaic_0001>

<bundles_post_ra>
// kernel: tpu_custom_call.1
= control target key start
LH: loop header
LB: loop body
LE: loop exit
PB: predicated region body
PF: predicated region fallthrough
CT: control target
= control target key end

     0   :  { %s1929_s0 = inlined_call_operand.hbm [shape: f32[4,8,32], index: 0, kind: input, shape index: {}]   ;;  %s1930_s1 = inlined_call_operand.hbm [shape: f32[3,8,8], index: 1, kind: input, shape index: {}]   ;;  %s1931_s2 = inlined_call_operand.vmem [shape: f32[8,1], index: 2, kind: input, shape index: {}]   ;;  %s1932_s3 = inlined_call_operand.hbm [shape: f32[3,8,8], index: 3, kind: input, shape index: {}]   ;;  %s1933_s4 = inlined_call_operand.vmem [shape: f32[8,8], index: 4, kind: input, shape index: {}]   ;;  %s1934_s5 = inlined_call_operand.hbm [shape: f32[4,8,32], index: 5, kind: output, shape index: {0}]   ;;  %s1935_s6 = inlined_call_operand.hbm [shape: f32[4,8,32], index: 6, kind: output, shape index: {1}]   ;;  %s1936_s7 = inlined_call_operand.vmem [shape: f32[4,8,2], index: 7, kind: output, shape index: {2}]   ;;  %s1937_s8 = inlined_call_operand.vmem [shape: f32[4,8,2], index: 8, kind: output, shape index: {3}]  }
   0x1   :  { %1943 = sst [smem:[#allocation15_spill]] %s1929_s0 }
   0x2   :  { %1944 = sst [smem:[#allocation16_spill]] %s1930_s1 }
   0x3   :  { %1945 = sst [smem:[#allocation17_spill]] %s1931_s2 }
   0x4   :  { %14 = vsyncpa [#allocation3], 0 }
   0x5   :  { %16 = vsyncpa [#allocation3 + $0x1], 0 }
   0x6   :  { %17 = vsyncpa [#allocation6], 0 }
   0x7   :  { %18 = vsyncpa [#allocation4], 0 }
   0x8   :  { %20 = vsyncpa [#allocation4 + $0x1], 0 }
   0x9   :  { %21 = vsyncpa [#allocation10], 0 }
   0xa   :  { %23 = vsyncpa [#allocation10 + $0x1], 0  ;;  %s1617_s27 = smov 0   ;;  %s1619_s28 = smov 0  }
   0xb   :  { %s1621_s29 = smov 0   ;;  %s1623_s30 = smov 0  }
   0xc LB: > { %s1638_s9 = sadd.s32 4294967295, %s1555_s30   ;;  %s1201_s10 = sadd.s32 4294967294, %s1555_s30   ;;  %s1555_s30 = sphi %s1623_s30, %s1966_s30   ;;  %s1551_s29 = sphi %s1621_s29, %s1965_s29   ;;  %s1547_s28 = sphi %s1619_s28, %s1964_s28   ;;  %s1543_s27 = sphi %s1617_s27, %s1963_s27  }
   0xd   : > { %p49_p0 = scmp.ne.s32.totalorder %s1547_s28, %s1543_s27  ;;  %p1938_p1 = scmp.eq.s32.totalorder %s1638_s9, 0 }
   0xe   : > { %p163_p3 = scmp.eq.s32.totalorder %s1201_s10, 3  ;;  %p1202_p5 = scmp.ge.s32.totalorder %s1555_s30, 1 }
   0xf   : > { %p1647_p4 = por %p1938_p1, %p49_p0  ;;  %p248_p7 = scmp.lt.s32.totalorder %s1555_s30, 5 }
  0x10   : > { %p1652_p6 = por %p163_p3, %p49_p0  ;;  %s1557_s14 = smov [#allocation5]  }
  0x11   : > { %s1946_s11 = scalar_select %p1647_p4, 1, 0 }
  0x12   : > { %s1947_s12 = scalar_select %p1652_p6, 1, 0 }
  0x13   : > { %p1657_p8 = pnand %p1202_p5, %p248_p7  ;;  %s260_s15 = sshll.u32 %s1557_s14, 4  ;;  %s261_s15 = int_to_ptr.vmem [resolvable:$true] %s260_s15 }
  0x14   : > { %s1558_s17 = smov [#allocation7]   ;;  %s1950_s1 = sld [smem:[#allocation16_spill]] }
  0x15   : > { %s1948_s13 = scalar_select %p1657_p8, 1, 0 }
  0x16   : > { %p1298_p9 = pneg %p1657_p8  ;;  %s276_s18 = sshll.u32 %s1558_s17, 4  ;;  %s1669_s18 = int_to_ptr.vmem [resolvable:$true] %s276_s18 }
  0x18   : > { %p1665_p10 = pnand %p1298_p9, %p1938_p1 }
  0x1a   : > { %s1367_s21 = scalar_lea.hbm %s1950_s1, 384  ;;  %p1369_p12 = pneg %p1665_p10 }
  0x1b   : > { %p1368_p11 = scmp.ne.s32.totalorder %s1950_s1, %s1367_s21  ;;  %p1374_p3 = scmp.lt.u32.totalorder %s1367_s21, %s1950_s1 }
  0x1d   : > { %p1370_p13 = pnand %p1369_p12, %p1368_p11 }
  0x1f   : > { %p1371_p0 = pneg %p1370_p13 }
  0x21   : > { %p1376_p5 = pnand %p1374_p3, %p1371_p0 }
  0x23   : > { %1379 = shalt.err (!%p1376_p5)
}
  0x24   : > { %s1380_s26 = scalar_lea.vmem %s261_s15, 384  ;;  %p1388_p2 = scmp.lt.s32.totalorder %s261_s15, %s261_s15 }
  0x25   : > { %p1381_p7 = scmp.ne.s32.totalorder %s261_s15, %s1380_s26  ;;  %p1389_p6 = scmp.lt.s32.totalorder %s1380_s26, %s1380_s26 }
  0x27   : > { %p1383_p9 = pnand %p1381_p7, %p1369_p12  ;;  %p1390_p4 = por %p1389_p6, %p1388_p2 }
  0x29   : > { %p1384_p1 = pneg %p1383_p9 }
  0x2b   : > { %p1391_p8 = pnand %p1390_p4, %p1384_p1 }
  0x2d   : > { %1394 = shalt.err (!%p1391_p8)
}
  0x2e   : > { %s1559_s10 = smov 128   ;;  %s1560_s14 = smov 8  }
  0x2f   : > { %1301 = dma.hbm_to_vmem [thread:$0]  (!%p1665_p10), %s1950_s1, 384, %s261_s15, [#allocation6], %s1559_s10, %s1559_s10, %s1560_s14  }
  0x30   : > { %s1395_s22 = scalar_lea.hbm %s1932_s3, 384 }
  0x31   : > { %p1396_p11 = scmp.ne.s32.totalorder %s1932_s3, %s1395_s22  ;;  %p1402_p4 = scmp.lt.u32.totalorder %s1395_s22, %s1932_s3 }
  0x33   : > { %p1398_p1 = pnand %p1396_p11, %p1369_p12 }
  0x35   : > { %p1399_p2 = pneg %p1398_p1 }
  0x37   : > { %p1404_p6 = pnand %p1402_p4, %p1399_p2 }
  0x39   : > { %1407 = shalt.err (!%p1404_p6)
}
  0x3a   : > { %s1408_s15 = scalar_lea.vmem %s1669_s18, 384  ;;  %p1416_p3 = scmp.lt.s32.totalorder %s1669_s18, %s1669_s18 }
  0x3b   : > { %p1409_p8 = scmp.ne.s32.totalorder %s1669_s18, %s1408_s15  ;;  %p1417_p5 = scmp.lt.s32.totalorder %s1408_s15, %s1408_s15 }
  0x3d   : > { %p1411_p13 = pnand %p1409_p8, %p1369_p12  ;;  %p1418_p7 = por %p1417_p5, %p1416_p3 }
  0x3f   : > { %p1412_p0 = pneg %p1411_p13 }
  0x41   : > { %p1419_p9 = pnand %p1418_p7, %p1412_p0 }
  0x43   : > { %1422 = shalt.err (!%p1419_p9)
}
  0x44   : > { %1304 = dma.hbm_to_vmem [thread:$0]  (!%p1665_p10), %s1932_s3, 384, %s1669_s18, [#allocation6], %s1559_s10, %s1559_s10, %s1560_s14  }
  0x45   : > { %s1719_s20 = sadd.s32 1, %s1555_s30   ;;  %s36_s16 = sadd.s32 1, %s1551_s29 }
  0x46   : > { %s33_s21 = ssub.s32 %s1555_s30, %s1719_s20  ;;  %p43_p12 = scmp.ne.s32.totalorder %s1551_s29, %s1547_s28 }
  0x47   : > { %p34_p11 = scmp.eq.s32.totalorder %s33_s21, 0  ;;  %p44_p1 = scmp.eq.s32.totalorder %s1555_s30, 0 }
  0x48   : > { %p1951_p2 = scmp.eq.s32.totalorder %s1638_s9, 3  ;;  %p1318_p6 = scmp.lt.s32.totalorder %s1555_s30, 4 }
  0x49   : > { %s1735_s23 = scalar_select %p34_p11, %s1551_s29, %s36_s16  }
  0x4a   : > { %p1729_p4 = por %p1951_p2, %p43_p12  ;;  %p45_p8 = por %p44_p1, %p43_p12 }
  0x4b   : > { %s293_s24 = sand.u32 1, %s1551_s29   ;;  %s1207_s18 = sshll.u32 %s1555_s30, 7 }
  0x4c   : > { %s1206_s25 = sshll.u32 %s293_s24, 3  ;;  %s1953_s0 = sld [smem:[#allocation15_spill]] }
  0x4d   : > { %s297_s15 = scalar_lea.vmem [#allocation2], %s1206_s25  ;;  %p1746_p10 = pnand %p1318_p6, %p45_p8 }
  0x4e   : > { %s304_s17 = sshll.u32 %s297_s15, 4  ;;  %s294_s16 = scalar_lea.sflag [#allocation3], %s293_s24  ;;  %s1744_s17 = int_to_ptr.vmem [resolvable:$true] %s304_s17 }
  0x4f   : > { %p1425_p0 = pneg %p1746_p10 }
  0x52   : > { %s1742_s26 = scalar_lea.hbm %s1953_s0, %s1207_s18  ;;  %s1428_s10 = scalar_lea.hbm %s1953_s0, 512 }
  0x53   : > { %s1423_s21 = scalar_lea.hbm %s1742_s26, 128  ;;  %p1429_p7 = scmp.lt.u32.totalorder %s1742_s26, %s1953_s0 }
  0x54   : > { %p1424_p13 = scmp.ne.s32.totalorder %s1742_s26, %s1423_s21  ;;  %p1430_p9 = scmp.lt.u32.totalorder %s1428_s10, %s1423_s21 }
  0x55   : > { %p1432_p11 = scmp.lt.u32.totalorder %s1423_s21, %s1742_s26 }
  0x56   : > { %p1426_p3 = pnand %p1425_p0, %p1424_p13  ;;  %p1431_p12 = por %p1430_p9, %p1429_p7 }
  0x58   : > { %p1427_p5 = pneg %p1426_p3  ;;  %p1433_p1 = por %p1432_p11, %p1431_p12 }
  0x5a   : > { %p1434_p2 = pnand %p1433_p1, %p1427_p5 }
  0x5c   : > { %1437 = shalt.err (!%p1434_p2)
}
  0x5d   : > { %s1438_s24 = scalar_lea.vmem %s1744_s17, 128  ;;  %s1561_s18 = smov [#allocation2]  }
  0x5e   : > { %p1439_p6 = scmp.ne.s32.totalorder %s1744_s17, %s1438_s24  ;;  %s1443_s25 = sshll.u32 %s1561_s18, 4  ;;  %s1444_s25 = int_to_ptr.vmem [resolvable:$false] %s1443_s25 }
  0x5f   : > { %s1445_s14 = scalar_lea.vmem %s1444_s25, 256  ;;  %p1446_p3 = scmp.lt.s32.totalorder %s1744_s17, %s1444_s25 }
  0x60   : > { %p1441_p8 = pnand %p1439_p6, %p1425_p0  ;;  %p1447_p7 = scmp.lt.s32.totalorder %s1445_s14, %s1438_s24 }
  0x62   : > { %p1442_p13 = pneg %p1441_p8  ;;  %p1448_p9 = por %p1447_p7, %p1446_p3 }
  0x64   : > { %p1449_p12 = pnand %p1448_p9, %p1442_p13 }
  0x66   : > { %1452 = shalt.err (!%p1449_p12)
}
  0x67   : > { %1308 = dma.hbm_to_vmem [thread:$0]  (!%p1746_p10), %s1742_s26, 128, %s1744_s17, %s294_s16  }
  0x68   : > { %p1955_p5 = scmp.ne.s32.totalorder %s1948_s13, 0 }
  0x69   : > { %s1778_s21 = sand.u32 (!%p1955_p5), 1, %s1547_s28   ;;  %p1956_p0 = scmp.ne.s32.totalorder (!%p1955_p5), %s1946_s11, 0 }
  0x6a   : > { %313 = sbr.rel (%p1955_p5) target bundleno = 1410 (0x582), region = 40  ;;  %s1781_s10 = sshll.u32 (!%p1955_p5), %s1778_s21, 3 }
  0x6b   : > { %s316_s15 = scalar_lea.sflag (!%p1955_p5), [#allocation3], %s1778_s21  ;;  %s319_s24 = scalar_lea.vmem (!%p1955_p5), [#allocation2], %s1781_s10 }
  0x71   : > { %1526 = dma.done.wait (%p1956_p0), %s316_s15, 128  }
  0x72   : > { %1528 = vsyncadd (%p1956_p0), %s316_s15, 4294967168  ;;  %p1957_p10 = scmp.eq.s32.totalorder %s1638_s9, 0 }
  0x74   : > { %1530 = dma.done.wait (%p1957_p10), [#allocation6], 768   ;;  %p1958_p11 = pmov %p1957_p10 }
  0x75   : > { %v381_v0 = vlaneseq  ;;  %v1562_v1 = vmov 0.0   ;;  %s1563_s13 = smov 31   ;;  %v389_v4 = vld [vmem:[%s319_s24] sm:$0xff]  ;;  %s1564_s11 = smov 32   ;;  %v409_v6 = vld [vmem:[#allocation5 + $0x8] sm:$0xff]  ;;  %vm410_vm2 = vcmask 64512  }
  0x76   : > { %1532 = vsyncadd (%p1958_p11), [#allocation6], 4294966528  ;;  %1245 = vmatprep.subr.mxu0 %v1562_v1  ;;  %1250 = vmatprep.subr.mxu1 %v1562_v1  ;;  %s1565_s26 = smov 1   ;;  %vm1566_vm3 = vmmov 0   ;;  %vm390_vm4 = vcmask 1047808   ;;  %v1567_v10 = vmov 0  }
  0x77   : > { %v382_v2 = vand.u32 127, %v381_v0  ;;  %391 = vrot.lane.b32.xlu0 %v389_v4, %s1564_s11  ;;  %1246 = vmatpush3.msra.mxu0 %v389_v4  ;;  %s1568_s17 = smov 127   ;;  %s1569_s19 = smov 97   ;;  %v407_v19 = vld [vmem:[#allocation5] sm:$0xff]  ;;  %v562_v20 = vld [vmem:[#allocation5 + $0x10] sm:$0xff]  ;;  %v656_v39 = vld [vmem:[#allocation7] sm:$0xff] }
  0x78   : > { %1255 = vmatprep.subr.mxu0 %v1562_v1  ;;  %1247 = vmatprep.mubr.msk.f32.mxu0 %vm1566_vm3, %v1562_v1  ;;  %s1959_s2 = sld [smem:[#allocation17_spill]]  ;;  %v658_v31 = vld [vmem:[#allocation7 + $0x8] sm:$0xff]  ;;  %v889_v35 = vld [vmem:[%s1933_s4] sm:$0xff]  ;;  %v810_v42 = vld [vmem:[#allocation7 + $0x10] sm:$0xff]  ;;  %vm963_vm5 = vcmask 261120   ;;  %s1941_s15 = scalar_lea.vmem [#allocation9], %s1781_s10 }
  0x79   : > { %vm383_vm0 = vcmp.ne.s32.totalorder %v382_v2, 0  ;;  %vm386_vm1 = vcmp.ne.s32.totalorder %v382_v2, 31  ;;  %1252 = vmatprep.mubr.msk.f32.mxu1 %vm1566_vm3, %v1562_v1  ;;  %1248 = vmatmul.mubr.msk.f32.vlgmr.msra.gmra.mrb[0].mxu0 %vm410_vm2, %v409_v6  ;;  %s353_s24 = scalar_lea.vmem [#allocation8], %s1781_s10  ;;  %s987_s16 = scalar_lea.sflag [#allocation4], %s1778_s21 }
  0x7a   : > { %v1216_v3 = vsel %vm383_vm0, 1.0, %v1562_v1  ;;  %v1217_v5 = vsel %vm386_vm1, 1.0, %v1562_v1  ;;  %1257 = vmatprep.mubr.msk.f32.mxu0 %vm1566_vm3, %v1562_v1  ;;  %1366 = vset.pattern.permute.xlu0 %v1567_v10  ;;  %s1570_s25 = smov [#allocation8]  }
  0x7b   : > { %398 = vrot.lane.b32.xlu1 %v1216_v3, %s1563_s13  ;;  %s1942_s13 = sshll.u32 %s1638_s9, 7  ;;  %s1457_s14 = sshll.u32 %s1570_s25, 4  ;;  %s1458_s14 = int_to_ptr.vmem [resolvable:$false] %s1457_s14 }
  0x7e   : > { %v641_v16 = vld [vmem:[%s1959_s2] sm:$0xff] }
  0x7f   : > { %403 = vrot.lane.b32.xlu1 %v1217_v5, %s1565_s26 }
  0xe9   : > { %v392_v7 = vpop.permute.xlu0 %391 }
  0xea   : > { %v393_v8 = vsel %vm390_vm4, %v392_v7, %v389_v4 }
  0xeb   : > { %394 = vrot.lane.b32.xlu0 %v393_v8, %s1564_s11 }
  0xed   : > { %v399_v9 = vpop.permute.xlu1 %398 }
  0xf1   : > { %v404_v11 = vpop.permute.xlu1 %403 }
 0x14c   : > { %v480_v17 = vpop.f32.mrb[0].mxu0 }
 0x14d   : > { %v1249_v18 = vpop.f32.mrb[1].mxu0 }
 0x15d   : > { %v395_v12 = vpop.permute.xlu0 %394 }
 0x15e   : > { %v396_v13 = vsel %vm390_vm4, %v395_v12, %v389_v4 }
 0x15f   : > { %v401_v14 = vmul.f32 %v399_v9, %v396_v13  ;;  %v406_v15 = vmul.f32 %v404_v11, %v396_v13 }
 0x161   : > { %564 = vrot.lane.b32.xlu1 %v406_v15, %s1568_s17  ;;  %485 = vrot.lane.b32.xlu0 %v401_v14, %s1569_s19 }
 0x165   : > { %644 = vperm.xlu0 %1366, %v641_v16  }
 0x1d3   : > { %v565_v21 = vpop.permute.xlu1 %564  ;;  %v486_v22 = vpop.permute.xlu0 %485 }
 0x1d4   : > { %1251 = vmatpush3.msra.mxu1 %v486_v22  ;;  %1256 = vmatpush3.msra.mxu0 %v565_v21 }
 0x1d5   : > { %1253 = vmatmul.mubr.msk.f32.vlgmr.msra.gmra.mrb[0].mxu1 %vm410_vm2, %v407_v19  ;;  %1258 = vmatmul.mubr.msk.f32.vlgmr.msra.gmra.mrb[2].mxu0 %vm410_vm2, %v562_v20 }
 0x1d6   : > { %1260 = vmatprep.subr.mxu1 %v1562_v1  ;;  %1275 = vmatprep.subr.mxu0 %v1562_v1 }
 0x1d7   : > { %1262 = vmatprep.mubr.msk.f32.mxu1 %vm1566_vm3, %v1562_v1  ;;  %1277 = vmatprep.mubr.msk.f32.mxu0 %vm1566_vm3, %v1562_v1 }
 0x1e4   : > { %v645_v28 = vpop.permute.xlu0 %644 }
 0x2a8   : > { %v557_v23 = vpop.f32.mrb[0].mxu1  ;;  %v636_v24 = vpop.f32.mrb[2].mxu0 }
 0x2a9   : > { %v558_v25 = vadd.f32 %v557_v23, %v480_v17  ;;  %v1254_v26 = vpop.f32.mrb[1].mxu1  ;;  %v1259_v27 = vpop.f32.mrb[3].mxu0 }
 0x2ab   : > { %v640_v29 = vadd.f32 %v636_v24, %v558_v25 }
 0x2ad   : > { %v647_v30 = vadd.f32 %v645_v28, %v640_v29 }
 0x2af   : > { %648 = vrot.lane.b32.xlu1 %v647_v30, %s1564_s11  ;;  %1261 = vmatpush3.msra.mxu1 %v647_v30 }
 0x2b0   : > { %1276 = vmatpush3.msra.mxu0 %v647_v30  ;;  %1265 = vmatprep.subr.mxu1 %v1562_v1 }
 0x2b1   : > { %1263 = vmatmul.mubr.msk.f32.vlgmr.msra.gmra.mrb[2].mxu1 %vm410_vm2, %v658_v31  ;;  %1278 = vmatmul.mubr.msk.f32.vlgmr.msra.gmra.mrb[4].mxu0 %vm410_vm2, %v889_v35 }
 0x2b2   : > { %1267 = vmatprep.mubr.msk.f32.mxu1 %vm1566_vm3, %v1562_v1 }
 0x321   : > { %v649_v32 = vpop.permute.xlu1 %648 }
 0x322   : > { %v650_v33 = vsel %vm390_vm4, %v649_v32, %v647_v30 }
 0x323   : > { %651 = vrot.lane.b32.xlu1 %v650_v33, %s1564_s11  ;;  %s1013_s11 = sshll.u32 %s353_s24, 4  ;;  %s1014_s11 = int_to_ptr.vmem [resolvable:$true] %s1013_s11 }
 0x324   : > { %s1453_s18 = scalar_lea.vmem %s1014_s11, 128  ;;  %p1460_p8 = scmp.lt.s32.totalorder %s1014_s11, %s1458_s14 }
 0x325   : > { %p1454_p1 = scmp.ne.s32.totalorder %s1014_s11, %s1453_s18 }
 0x327   : > { %p1455_p2 = pnand %p1454_p1, %p1729_p4 }
 0x329   : > { %p1456_p6 = pneg %p1455_p2 }
 0x384   : > { %v959_v43 = vpop.f32.mrb[4].mxu0 }
 0x385   : > { %965 = vst.msk [vmem:[%s1941_s15] sm:$0xff] %vm963_vm5, %v959_v43  ;;  %v1279_v44 = vpop.f32.mrb[5].mxu0  ;;  %v977_v50 = vsel %vm963_vm5, %v959_v43, 0.0  ;;  %v980_v51 = vmul.f32 %v959_v43, %v959_v43  ;;  %s1459_s15 = scalar_lea.vmem %s1458_s14, 256 }
 0x386   : > { %p1461_p13 = scmp.lt.s32.totalorder %s1459_s15, %s1453_s18 }
 0x387   : > { %v981_v52 = vsel %vm963_vm5, %v980_v51, 0.0 }
 0x388   : > { %p1462_p3 = por %p1461_p13, %p1460_p8 }
 0x38a   : > { %p1463_p7 = pnand %p1462_p3, %p1456_p6 }
 0x395   : > { %v652_v34 = vpop.permute.xlu1 %651 }
 0x396   : > { %v653_v36 = vsel %vm390_vm4, %v652_v34, %v647_v30 }
 0x397   : > { %v654_v37 = vmul.f32 %v653_v36, %v399_v9  ;;  %v655_v38 = vmul.f32 %v653_v36, %v404_v11 }
 0x399   : > { %812 = vrot.lane.b32.xlu1 %v655_v38, %s1568_s17  ;;  %733 = vrot.lane.b32.xlu0 %v654_v37, %s1569_s19  ;;  %s1857_s19 = scalar_lea.hbm %s1934_s5, %s1942_s13 }
 0x40b   : > { %v734_v40 = vpop.permute.xlu0 %733  ;;  %v813_v41 = vpop.permute.xlu1 %812 }
 0x40c   : > { %1266 = vmatpush3.msra.mxu1 %v734_v40 }
 0x40d   : > { %1268 = vmatmul.mubr.msk.f32.vlgmr.msra.gmra.mrb[2].mxu1 %vm410_vm2, %v656_v39  ;;  %1270 = vmatprep.subr.mxu1 %v1562_v1 }
 0x40e   : > { %1271 = vmatpush3.msra.mxu1 %v813_v41  ;;  %1272 = vmatprep.mubr.msk.f32.mxu1 %vm1566_vm3, %v1562_v1 }
 0x415   : > { %1273 = vmatmul.mubr.msk.f32.vlgmr.msra.gmra.mrb[2].mxu1 %vm410_vm2, %v810_v42 }
 0x4e8   : > { %v884_v45 = vpop.f32.mrb[2].mxu1 }
 0x4e9   : > { %964 = vst.msk [vmem:[%s353_s24] sm:$0xff] %vm963_vm5, %v884_v45  ;;  %v1274_v46 = vpop.f32.mrb[3].mxu1  ;;  %v966_v47 = vsel %vm963_vm5, %v884_v45, 0.0  ;;  %v969_v48 = vmul.f32 %v884_v45, %v884_v45 }
 0x4ea   : > { %967 = vadd.xlane.f32.xlu0 %v966_v47 }
 0x4eb   : > { %v970_v49 = vsel %vm963_vm5, %v969_v48, 0.0 }
 0x4ec   : > { %971 = vadd.xlane.f32.xlu1 %v970_v49 }
 0x4ee   : > { %978 = vadd.xlane.f32.xlu0 %v977_v50 }
 0x4f2   : > { %982 = vadd.xlane.f32.xlu0 %v981_v52 }
 0x4f3   : > { %1466 = shalt.err (!%p1463_p7)
}
 0x4f4   : > { %s1467_s24 = scalar_lea.hbm %s1857_s19, 128  ;;  %s1471_s25 = scalar_lea.hbm %s1934_s5, 512 }
 0x4f5   : > { %p1468_p9 = scmp.ne.s32.totalorder %s1857_s19, %s1467_s24  ;;  %p1472_p0 = scmp.lt.u32.totalorder %s1857_s19, %s1934_s5 }
 0x4f6   : > { %p1473_p10 = scmp.lt.u32.totalorder %s1471_s25, %s1467_s24  ;;  %p1475_p1 = scmp.lt.u32.totalorder %s1467_s24, %s1857_s19 }
 0x4f7   : > { %p1469_p12 = pnand %p1468_p9, %p1729_p4 }
 0x4f8   : > { %p1474_p11 = por %p1473_p10, %p1472_p0 }
 0x4f9   : > { %p1470_p5 = pneg %p1469_p12 }
 0x4fa   : > { %p1476_p2 = por %p1475_p1, %p1474_p11 }
 0x4fc   : > { %p1477_p6 = pnand %p1476_p2, %p1470_p5 }
 0x4fe   : > { %1480 = shalt.err (!%p1477_p6)
}
 0x4ff   : > { %1294 = dma.vmem_to_hbm [thread:$0]  (%p1729_p4), %s1014_s11, 128, %s1857_s19, %s987_s16  }
 0x500   : > { %s1960_s15 = sshll.u32 %s1638_s9, 7  ;;  %s1961_s17 = scalar_lea.vmem [#allocation9], %s1781_s10 }
 0x501   : > { %s1882_s13 = scalar_lea.hbm %s1935_s6, %s1960_s15  ;;  %s1026_s25 = sshll.u32 %s1961_s17, 4  ;;  %s1027_s25 = int_to_ptr.vmem [resolvable:$true] %s1026_s25 }
 0x502   : > { %s992_s24 = scalar_lea.sflag [#allocation10], %s1778_s21  ;;  %s1481_s14 = scalar_lea.vmem %s1027_s25, 128 }
 0x503   : > { %p1482_p8 = scmp.ne.s32.totalorder %s1027_s25, %s1481_s14  ;;  %s1571_s0 = smov [#allocation9]  }
 0x504   : > { %s1485_s1 = sshll.u32 %s1571_s0, 4  ;;  %s1486_s1 = int_to_ptr.vmem [resolvable:$false] %s1485_s1 }
 0x505   : > { %p1483_p13 = pnand %p1482_p8, %p1729_p4  ;;  %s1487_s2 = scalar_lea.vmem %s1486_s1, 256 }
 0x506   : > { %p1488_p7 = scmp.lt.s32.totalorder %s1027_s25, %s1486_s1  ;;  %p1489_p9 = scmp.lt.s32.totalorder %s1487_s2, %s1481_s14 }
 0x507   : > { %p1484_p3 = pneg %p1483_p13 }
 0x508   : > { %p1490_p12 = por %p1489_p9, %p1488_p7 }
 0x50a   : > { %p1491_p5 = pnand %p1490_p12, %p1484_p3 }
 0x50c   : > { %1494 = shalt.err (!%p1491_p5)
}
 0x50d   : > { %s1495_s21 = scalar_lea.hbm %s1882_s13, 128  ;;  %s1499_s0 = scalar_lea.hbm %s1935_s6, 512 }
 0x50e   : > { %p1496_p0 = scmp.ne.s32.totalorder %s1882_s13, %s1495_s21  ;;  %p1500_p1 = scmp.lt.u32.totalorder %s1882_s13, %s1935_s6 }
 0x50f   : > { %p1501_p2 = scmp.lt.u32.totalorder %s1499_s0, %s1495_s21  ;;  %p1503_p8 = scmp.lt.u32.totalorder %s1495_s21, %s1882_s13 }
 0x510   : > { %p1497_p10 = pnand %p1496_p0, %p1729_p4 }
 0x511   : > { %p1502_p6 = por %p1501_p2, %p1500_p1 }
 0x512   : > { %p1498_p11 = pneg %p1497_p10 }
 0x513   : > { %p1504_p13 = por %p1503_p8, %p1502_p6 }
 0x515   : > { %p1505_p3 = pnand %p1504_p13, %p1498_p11 }
 0x517   : > { %1508 = shalt.err (!%p1505_p3)
}
 0x518   : > { %1295 = dma.vmem_to_hbm [thread:$0]  (%p1729_p4), %s1027_s25, 128, %s1882_s13, %s992_s24   ;;  %vm973_vm6 = vcmask 7168   ;;  %vm975_vm7 = vcmask 15360  }
 0x519   : > { %p373_p7 = scmp.lt.s32.totalorder %s1638_s9, 3 }
 0x51b   : > { %s1968_s9 = smov (!%p373_p7, %s1638_s9), 3 }
 0x51c   : > { %s1214_s2 = sshll.u32 %s1968_s9, 3 }
 0x51d   : > { %s376_s18 = scalar_lea.vmem %s1936_s7, %s1214_s2  ;;  %s380_s17 = scalar_lea.vmem %s1937_s8, %s1214_s2 }
 0x577   : > { %v968_v53 = vpop.xlane.xlu0 %967 }
 0x579   : > { %v972_v54 = vpop.xlane.xlu1 %971 }
 0x57a   : > { %v974_v55 = vsel %vm973_vm6, %v968_v53, %v972_v54 }
 0x57b   : > { %976 = vst.msk [vmem:[%s376_s18] sm:$0xff] %vm975_vm7, %v974_v55  ;;  %v979_v56 = vpop.xlane.xlu0 %978 }
 0x57f   : > { %v983_v57 = vpop.xlane.xlu0 %982 }
 0x580   : > { %v984_v58 = vsel %vm973_vm6, %v979_v56, %v983_v57 }
 0x581   : > { %985 = vst.msk [vmem:[%s380_s17] sm:$0xff] %vm975_vm7, %v984_v58 }
 0x582 PF: > { %p1321_p4 = scmp.ge.s32.totalorder %s1555_s30, 2  ;;  %s1044_s9 = sand.u32 1, %s1543_s27  }
 0x583   : > { %p1962_p9 = scmp.ne.s32.totalorder %s1947_s12, 0  ;;  %s1045_s13 = scalar_lea.sflag [#allocation4], %s1044_s9 }
 0x585   : > { %p1310_p12 = pnand %p1321_p4, %p1962_p9 }
 0x587   : > { %1534 = dma.done.wait (!%p1310_p12), %s1045_s13, 128  }
 0x588   : > { %1536 = vsyncadd (!%p1310_p12), %s1045_s13, 4294967168  ;;  %s1054_s25 = scalar_lea.sflag [#allocation10], %s1044_s9 }
 0x589   : > { %1538 = dma.done.wait (!%p1310_p12), %s1054_s25, 128  }
 0x58a   : > { %1540 = vsyncadd (!%p1310_p12), %s1054_s25, 4294967168  ;;  %p26_p5 = scmp.ge.s32.totalorder %s1719_s20, 6   ;;  %s1963_s27 = smov %s1547_s28 }
 0x58b   : > { %s1964_s28 = smov %s1551_s29  ;;  %s1965_s29 = smov %s1735_s23 }
 0x58c   : > { %s1966_s30 = smov %s1719_s20  ;;  %28 = sbr.rel (!%p26_p5) target bundleno = 12 (0xc), region = 138 }
 0x593   :  { %1073 = vsyncpa [#allocation3], 1 }
 0x594   :  { %1075 = vsyncpa [#allocation3 + $0x1], 1 }
 0x595   :  { %1076 = vsyncpa [#allocation6], 1 }
 0x596   :  { %1077 = vsyncpa [#allocation4], 1 }
 0x597   :  { %1079 = vsyncpa [#allocation4 + $0x1], 1 }
 0x598   :  { %1080 = vsyncpa [#allocation10], 1 }
 0x599   :  { %1082 = vsyncpa [#allocation10 + $0x1], 1 }

</bundles_post_ra>
